<compile_context>
chip_gen: v7x
topology: tpu7x:2x2x1
jax: 0.10.0
libtpu: 0.0.40
codegen_flags: <defaults>
</compile_context>

<pallas_src>
import math

import jax
import jax.numpy as jnp
from jax.experimental import pallas as pl
from jax.experimental.pallas import tpu as pltpu


def _build_pe_table(d_model: int, max_len: int = 5000) -> jnp.ndarray:
    """Sinusoidal positional-encoding buffer, shape (max_len, d_model) float32.

    Mirrors the PyTorch __init__ (the unsqueeze/transpose there only adds a size-1
    broadcast dim, which the wrapper handles via broadcasting)."""
    position = jnp.arange(max_len, dtype=jnp.float32)[:, None]                # (max_len, 1)
    div_term = jnp.exp(
        jnp.arange(0, d_model, 2, dtype=jnp.float32) * (-math.log(10000.0) / d_model)
    )                                                                          # (d_model//2,)
    pe = jnp.zeros((max_len, d_model), dtype=jnp.float32)
    pe = pe.at[:, 0::2].set(jnp.sin(position * div_term))
    pe = pe.at[:, 1::2].set(jnp.cos(position * div_term))
    return pe


def _pe_add_kernel(x_ref, pe_ref, o_ref):
    # x/o block: (TB, TR, W); pe block: (1, TR, W). The size-1 leading dim of pe
    # broadcasts over the batch tile — no in-kernel reshape / broadcast_in_dim call.
    o_ref[...] = x_ref[...] + pe_ref[...]


def _pick_tiles(batch: int, rows: int, row_bytes: int, target_block_bytes: int):
    """Pick (TB, TR) so each x/out block stays under target_block_bytes.

    TR must be a multiple of 8 or the full row extent to satisfy the (8, 128)
    BlockSpec constraint on the second-to-last dim. DMAs stay fully contiguous:
    TB > 1 only when the whole array fits in a single block."""
    if batch * rows * row_bytes <= target_block_bytes:
        return batch, rows                      # whole array in one block (tiny shapes)
    if rows * row_bytes <= target_block_bytes:
        return 1, rows                          # one batch element per block
    best = None
    t = 8
    while t <= rows:                            # largest multiple-of-8 divisor that fits
        if rows % t == 0 and t * row_bytes <= target_block_bytes:
            best = t
        t += 8
    if best is None:
        best = rows                             # full-extent fallback (always legal)
    return 1, best


def positional_encoding_forward(
    x: jnp.ndarray,
    pe_table: jnp.ndarray,
    *,
    # ~2 MiB per x/out block -> <= ~12 MiB of double-buffered VMEM (x, out, pe),
    # safe under the default scoped VMEM limit on v5e (16 MiB) and v6e/v7x (32 MiB),
    # while staying in the large-tile (~85% HBM roofline) regime.
    target_block_bytes: int = 2 << 20,
) -> jnp.ndarray:
    """x: (B, S, D);  pe_table: (max_len, D).  Returns x + pe_table[:S] broadcast over B."""
    B, S, D = x.shape
    pe_slice = pe_table[:S, :].astype(x.dtype)          # (S, D) — glue slice in plain JAX
    itemsize = jnp.dtype(x.dtype).itemsize

    L = S * D
    if L % 128 == 0:
        # Lane-dense view: flatten each batch's (S, D) slab into rows of exactly 128
        # lanes so output stores are full (unmasked) vst even when D < 128 or
        # D % 128 != 0. Pure metadata reshape; values and their order are unchanged.
        W = 128
        R = L // 128
        x_v = x.reshape(B, R, W)
        pe_v = pe_slice.reshape(1, R, W)                 # pre-shaped (1, R, W) in the wrapper
    else:
        # Rare fallback: keep the original layout; full-extent last dim is always legal.
        # TODO(synk): pad D up to a multiple of 128 if this path ever sees large shapes.
        W = D
        R = S
        x_v = x
        pe_v = pe_slice.reshape(1, S, D)

    TB, TR = _pick_tiles(B, R, W * itemsize, target_block_bytes)
    grid = (pl.cdiv(B, TB), R // TR)

    out_v = pl.pallas_call(
        _pe_add_kernel,
        out_shape=jax.ShapeDtypeStruct((B, R, W), x.dtype),
        grid_spec=pltpu.PrefetchScalarGridSpec(
            num_scalar_prefetch=0,
            grid=grid,
            in_specs=[
                pl.BlockSpec((TB, TR, W), lambda i, j: (i, j, 0)),
                # pe is tiled along the row axis with the same index as x, so it only
                # ever holds a TR*W block (no full-length S*D double buffer).
                pl.BlockSpec((1, TR, W), lambda i, j: (0, j, 0)),
            ],
            out_specs=pl.BlockSpec((TB, TR, W), lambda i, j: (i, j, 0)),
        ),
        compiler_params=pltpu.CompilerParams(
            # Pure elementwise add: both grid axes are independent, so both can be
            # sharded across TensorCores (v7x megacore).
            dimension_semantics=("parallel", "parallel"),
        ),
    )(x_v, pe_v)

    return out_v.reshape(B, S, D)


if __name__ == "__main__":
    B, S, D = 2, 8, 32          # batch, seq_len, d_model
    MAX_LEN = 64                # small max_len for the synthetic buffer

    key = jax.random.PRNGKey(0)
    x = jax.random.normal(key, (B, S, D), dtype=jnp.float32)

    pe_table = _build_pe_table(D, MAX_LEN)

    out = positional_encoding_forward(x, pe_table)
    out = jax.block_until_ready(out)

    # Pure-JAX reference check (same semantics as the PyTorch forward).
    ref = x + pe_table[:S, :][None, :, :]
    assert out.shape == (B, S, D)
    assert jnp.allclose(out, ref, atol=1e-6), "mismatch vs reference"

    print("KERNEL_OK")
</pallas_src>

<mosaic_0001>
module attributes {stable_mosaic.version = 11 : i64} {
  func.func @_pe_add_kernel(%arg0: i32, %arg1: i32, %arg2: memref<2x2x128xf32, #tpu.memory_space<vmem>>, %arg3: memref<1x2x128xf32, #tpu.memory_space<vmem>>, %arg4: memref<2x2x128xf32, #tpu.memory_space<vmem>>) attributes {dimension_semantics = [#tpu.dimension_semantics<parallel>, #tpu.dimension_semantics<parallel>], iteration_bounds = array<i64: 1, 1>, scalar_prefetch = 0 : i64, scratch_operands = 0 : i64, tpu.core_type = #tpu.core_type<tc>, window_params = [{transform_indices = @transform_0, window_bounds = array<i64: 2, 2, 128>}, {transform_indices = @transform_1, window_bounds = array<i64: 1, 2, 128>}, {transform_indices = @transform_2, window_bounds = array<i64: 2, 2, 128>}]} {
    %c0 = arith.constant 0 : index
    %c0_0 = arith.constant 0 : index
    %c0_1 = arith.constant 0 : index
    %0 = vector.load %arg2[%c0, %c0_0, %c0_1] : memref<2x2x128xf32, #tpu.memory_space<vmem>>, vector<2x2x128xf32>
    %c0_2 = arith.constant 0 : index
    %c0_3 = arith.constant 0 : index
    %c0_4 = arith.constant 0 : index
    %1 = vector.load %arg3[%c0_2, %c0_3, %c0_4] : memref<1x2x128xf32, #tpu.memory_space<vmem>>, vector<1x2x128xf32>
    %2 = vector.broadcast %1 : vector<1x2x128xf32> to vector<2x2x128xf32>
    %3 = arith.addf %0, %2 : vector<2x2x128xf32>
    %c0_5 = arith.constant 0 : index
    %c0_6 = arith.constant 0 : index
    %c0_7 = arith.constant 0 : index
    %4 = vector.load %arg4[%c0_5, %c0_6, %c0_7] : memref<2x2x128xf32, #tpu.memory_space<vmem>>, vector<2x2x128xf32>
    tpu.vector_store %arg4[%c0_5, %c0_6, %c0_7], %3 {strides = array<i32>} : memref<2x2x128xf32, #tpu.memory_space<vmem>>, vector<2x2x128xf32>,
    return
  }
  func.func @transform_0(%arg0: i32, %arg1: i32) -> (i32, i32, i32) {
    %c0_i32 = arith.constant 0 : i32
    %c0_i32_0 = arith.constant 0 : i32
    return %arg0, %arg1, %c0_i32 : i32, i32, i32
  }
  func.func @transform_1(%arg0: i32, %arg1: i32) -> (i32, i32, i32) {
    %c0_i32 = arith.constant 0 : i32
    %c0_i32_0 = arith.constant 0 : i32
    %c0_i32_1 = arith.constant 0 : i32
    return %c0_i32, %arg1, %c0_i32_0 : i32, i32, i32
  }
  func.func @transform_2(%arg0: i32, %arg1: i32) -> (i32, i32, i32) {
    %c0_i32 = arith.constant 0 : i32
    %c0_i32_0 = arith.constant 0 : i32
    return %arg0, %arg1, %c0_i32 : i32, i32, i32
  }
}

</mosaic_0001>

<bundles_post_ra>
// kernel: tpu_custom_call.1
= control target key start
LH: loop header
LB: loop body
LE: loop exit
PB: predicated region body
PF: predicated region fallthrough
CT: control target
= control target key end

     0   :  { %7 = vsyncpa [#allocation3], 0  ;;  %s154_s0 = inlined_call_operand.hbm [shape: f32[2,2,128], index: 0, kind: input, shape index: {}]   ;;  %s155_s1 = inlined_call_operand.vmem [shape: f32[1,2,128], index: 1, kind: input, shape index: {}]   ;;  %s156_s2 = inlined_call_operand.hbm [shape: f32[2,2,128], index: 2, kind: output, shape index: {}]  }
   0x1   :  { %8 = vsyncpa [#allocation4], 0  ;;  %s102_s9 = smov [#allocation2]   ;;  %s54_s13 = scalar_lea.hbm %s154_s0, 64 }
   0x2   :  { %s14_s10 = sshll.u32 %s102_s9, 4  ;;  %p55_p0 = scmp.ne.s32.totalorder %s154_s0, %s54_s13  ;;  %s15_s10 = int_to_ptr.vmem [resolvable:$true] %s14_s10 }
   0x3   :  { %p58_p1 = scmp.lt.u32.totalorder %s54_s13, %s154_s0 }
   0x5   :  { %p60_p2 = pnand %p58_p1, %p55_p0 }
   0x7   :  { %63 = shalt.err (!%p60_p2)
}
   0x8   :  { %s64_s18 = scalar_lea.vmem %s15_s10, 64  ;;  %p69_p4 = scmp.lt.s32.totalorder %s15_s10, %s15_s10 }
   0x9   :  { %p65_p3 = scmp.ne.s32.totalorder %s15_s10, %s64_s18  ;;  %p70_p5 = scmp.lt.s32.totalorder %s64_s18, %s64_s18 }
   0xb   :  { %p71_p6 = por %p70_p5, %p69_p4 }
   0xd   :  { %p72_p7 = pnand %p71_p6, %p65_p3 }
   0xf   :  { %75 = shalt.err (!%p72_p7)
}
  0x10   :  { %s103_s19 = smov 32   ;;  %s104_s20 = smov 2  }
  0x11   :  { %20 = dma.hbm_to_vmem [thread:$0]  %s154_s0, 64, %s15_s10, [#allocation3], %s103_s19, %s103_s19, %s104_s20  }
  0x12   :  { %98 = dma.done.wait [#allocation3], 64  }
  0x13   :  { %99 = vsyncadd [#allocation3], 4294967232  ;;  %s105_s23 = smov [#allocation5]   ;;  %v26_v0 = vld [vmem:[#allocation2] sm:$0x3] }
  0x14   :  { %s38_s24 = sshll.u32 %s105_s23, 4  ;;  %v28_v1 = vld [vmem:[%s155_s1] sm:$0x3]  ;;  %v27_v2 = vld [vmem:[#allocation2 + $0x2] sm:$0x3]  ;;  %s39_s24 = int_to_ptr.vmem [resolvable:$true] %s38_s24 }
  0x15   :  { %v29_v3 = vadd.f32 %v28_v1, %v26_v0  ;;  %v30_v4 = vadd.f32 %v28_v1, %v27_v2  ;;  %s76_s27 = scalar_lea.vmem %s39_s24, 64  ;;  %p81_p9 = scmp.lt.s32.totalorder %s39_s24, %s39_s24 }
  0x16   :  { %p77_p8 = scmp.ne.s32.totalorder %s39_s24, %s76_s27  ;;  %p82_p10 = scmp.lt.s32.totalorder %s76_s27, %s76_s27 }
  0x17   :  { %31 = vst [vmem:[#allocation5] sm:$0x3] %v29_v3  ;;  %32 = vst [vmem:[#allocation5 + $0x2] sm:$0x3] %v30_v4 }
  0x18   :  { %p83_p11 = por %p82_p10, %p81_p9 }
  0x1a   :  { %p84_p12 = pnand %p83_p11, %p77_p8 }
  0x1c   :  { %87 = shalt.err (!%p84_p12)
}
  0x1d   :  { %s88_s29 = scalar_lea.hbm %s156_s2, 64 }
  0x1e   :  { %p89_p13 = scmp.ne.s32.totalorder %s156_s2, %s88_s29  ;;  %p92_p0 = scmp.lt.u32.totalorder %s88_s29, %s156_s2 }
  0x20   :  { %p94_p1 = pnand %p92_p0, %p89_p13 }
  0x22   :  { %97 = shalt.err (!%p94_p1)
}
  0x23   :  { %44 = dma.vmem_to_hbm [thread:$0]  %s39_s24, 64, %s156_s2, [#allocation4], %s103_s19, %s103_s19, %s104_s20  }
  0x24   :  { %100 = dma.done.wait [#allocation4], 64  }
  0x25   :  { %101 = vsyncadd [#allocation4], 4294967232 }
  0x26   :  { %48 = vsyncpa [#allocation3], 1 }
  0x27   :  { %49 = vsyncpa [#allocation4], 1 }

</bundles_post_ra>
